<compile_context>
chip_gen: v7x
topology: tpu7x:2x2x1
jax: 0.10.0
libtpu: 0.0.40
codegen_flags: <defaults>
</compile_context>

<pallas_src>
import functools

import jax
import jax.numpy as jnp
from jax.experimental import pallas as pl
from jax.experimental.pallas import tpu as pltpu


def _round_up(x, m):
    return (x + m - 1) // m * m


def _pick_block_batch(batch, target):
    """Batch tile: largest multiple-of-8 tile <= min(target, batch).

    For tiny or non-8-aligned batches we use a single block equal to the full
    batch dim (block_shape == array dim is always legal)."""
    if batch <= 8 or batch % 8 != 0:
        return batch
    return max(8, min((target // 8) * 8, batch))


def _attention_kernel(z_ref, w1_ref, b1_ref, w2_ref, packed_ref, *,
                      num_views, in_size):
    # z_ref:      (TB, N*D)       TB batches, views*features flat on lanes
    # w1_ref:     (N*D, N*H)      block-diagonal W1 (shared across grid steps)
    # b1_ref:     (1, N*H)        b1 tiled per view (f32)
    # w2_ref:     (N*H, N)        block-diagonal W2 (f32)
    # packed_ref: (TB, P)         P = round_up(D + N, 128); lanes [0,D)=out,
    #                             [D,D+N)=alpha, rest zero  -> lane-dense store
    z2 = z_ref[...]                                              # (TB, N*D)

    # First Linear for all TB*N (batch, view) rows as ONE MXU matmul (+bias,
    # ReLU).  Bias add is a single VPU add over the h tile; folding it into the
    # matmul would require appending a constant-1 lane to z (an extra HBM copy
    # of z), so it is intentionally kept here.
    h = jnp.dot(z2, w1_ref[...], preferred_element_type=jnp.float32)
    h = jnp.maximum(h + b1_ref[...], 0.0)                        # (TB, N*H) f32

    # Per-view score Linear, grouped into one matmul: (TB, N*H) @ (N*H, N).
    s = jnp.dot(h, w2_ref[...].astype(jnp.float32),
                preferred_element_type=jnp.float32)              # (TB, N)

    # Softmax over the view axis = lane-axis reduce on the (TB, N) tile.
    m = jnp.max(s, axis=-1, keepdims=True)
    e = jnp.exp(s - m)
    denom = jnp.sum(e, axis=-1, keepdims=True)
    # approx=True -> EUP vrcp (free slot); restores ~1e-4 with approx=False.
    alpha = e * pl.reciprocal(denom, approx=True)                # (TB, N)

    # Weighted sum over views: out[t, :] = sum_n alpha[t, n] * z[t, n, :]
    # (static lane slices of the flattened z slab; N is small and static).
    zf = z2.astype(jnp.float32)
    out = alpha[:, 0:1] * zf[:, 0:in_size]
    for n in range(1, num_views):
        out = out + alpha[:, n:(n + 1)] * zf[:, n * in_size:(n + 1) * in_size]

    # Lane-dense packed writeback: [ out | alpha | zeros ].  The full 128*k
    # lane tile goes to HBM as one unmasked, dense DMA.
    packed_ref[...] = jnp.zeros_like(packed_ref)
    packed_ref[:, 0:in_size] = out.astype(packed_ref.dtype)
    packed_ref[:, in_size:in_size + num_views] = alpha.astype(packed_ref.dtype)


def make_attention_forward(w1, b1, w2, num_views, *, block_batch=512,
                           compute_dtype=jnp.float32):
    """Build a jitted forward(z) for fixed params / view count.

    w1: (D, H), b1: (H,), w2: (H, 1).  Weight preparation (kron / tile / cast)
    runs once here, not on every call.  compute_dtype=jnp.bfloat16 halves the
    dominant z / W1 HBM streams on v6e/v7x (tolerance relaxes to ~1e-2)."""
    D, H = w1.shape
    N = int(num_views)

    # Block-diagonal weights so the whole TB*N row slab is one matmul per
    # layer.  NOTE: w1_big is N^2*D*H*bytes (256 KiB here) and the matmul does
    # N x the necessary FLOPs -- fine while memory-bound at small N*D; for
    # large N or D switch to a (TB*N, D) @ (D, H) formulation instead.
    eye_n = jnp.eye(N, dtype=jnp.float32)
    w1_big = jnp.kron(eye_n, w1.astype(jnp.float32)).astype(compute_dtype)
    b1_big = jnp.tile(b1.astype(jnp.float32).reshape(1, H), (1, N))   # (1, N*H)
    w2_big = jnp.kron(eye_n, w2.astype(jnp.float32))                  # (N*H, N)

    P = _round_up(D + N, 128)   # packed-output lane width (multiple of 128)

    kernel = functools.partial(_attention_kernel, num_views=N, in_size=D)

    def fwd(z):
        B = z.shape[0]
        assert z.shape[1] == N and z.shape[2] == D
        tb = _pick_block_batch(B, block_batch)
        grid = (pl.cdiv(B, tb),)

        # Contiguous => metadata-only reshape; no jnp.pad (ragged tail block
        # rows, if any, compute garbage that never reaches the valid rows).
        z_flat = z.reshape(B, N * D).astype(compute_dtype)

        grid_spec = pltpu.PrefetchScalarGridSpec(
            num_scalar_prefetch=0,
            grid=grid,
            in_specs=[
                pl.BlockSpec((tb, N * D), lambda b: (b, 0)),      # z slab
                pl.BlockSpec((N * D, N * H), lambda b: (0, 0)),   # W1 (shared)
                pl.BlockSpec((1, N * H), lambda b: (0, 0)),       # b1 (shared)
                pl.BlockSpec((N * H, N), lambda b: (0, 0)),       # W2 (shared)
            ],
            out_specs=pl.BlockSpec((tb, P), lambda b: (b, 0)),    # packed slab
        )

        packed = pl.pallas_call(
            kernel,
            out_shape=jax.ShapeDtypeStruct((B, P), jnp.float32),
            grid_spec=grid_spec,
            compiler_params=pltpu.CompilerParams(
                dimension_semantics=("parallel",),
            ),
        )(z_flat, w1_big, b1_big, w2_big)

        out = packed[:, :D]
        alpha = packed[:, D:D + N].reshape(B, N, 1)
        return out, alpha

    return jax.jit(fwd)


def attention_reference(z, w1, b1, w2):
    h = jnp.maximum(jnp.einsum("bnd,dh->bnh", z, w1) + b1, 0.0)
    w = jnp.einsum("bnh,ho->bno", h, w2)  # (B, N, 1)
    alpha = jax.nn.softmax(w, axis=1)
    out = jnp.sum(alpha * z, axis=1)
    return out, alpha


if __name__ == "__main__":
    # batch=16, views=4, in_size=32, hidden=128 (module's default hidden_size)
    B, N, D, H = 16, 4, 32, 128

    key = jax.random.PRNGKey(0)
    kz, kw1, kb1, kw2 = jax.random.split(key, 4)
    z = jax.random.normal(kz, (B, N, D), dtype=jnp.float32)
    # Deterministic parameter init (synthetic; mirrors nn.Linear shapes).
    w1 = jax.random.normal(kw1, (D, H), dtype=jnp.float32) * 0.1
    b1 = jax.random.normal(kb1, (H,), dtype=jnp.float32) * 0.1
    w2 = jax.random.normal(kw2, (H, 1), dtype=jnp.float32) * 0.1

    # Demo batch is tiny, so block_batch=8 gives a grid of length 2 (both v7x
    # TensorCores get work).  Real workloads should use the default 512.
    attn = make_attention_forward(w1, b1, w2, num_views=N, block_batch=8)

    out, alpha = attn(z)
    out = jax.block_until_ready(out)
    alpha = jax.block_until_ready(alpha)

    out_ref, alpha_ref = attention_reference(z, w1, b1, w2)
    # 1e-2 tolerance: f32 math end-to-end, approx (EUP) reciprocal in softmax.
    assert jnp.allclose(out, out_ref, atol=1e-2, rtol=1e-2), "output mismatch"
    assert jnp.allclose(alpha, alpha_ref, atol=1e-2, rtol=1e-2), "alpha mismatch"

    print("KERNEL_OK")
</pallas_src>

<mosaic_0001>
module attributes {stable_mosaic.version = 11 : i64} {
  func.func @_attention_kernel(%arg0: i32, %arg1: memref<8x128xf32, #tpu.memory_space<vmem>>, %arg2: memref<128x512xf32, #tpu.memory_space<vmem>>, %arg3: memref<1x512xf32, #tpu.memory_space<vmem>>, %arg4: memref<512x4xf32, #tpu.memory_space<vmem>>, %arg5: memref<8x128xf32, #tpu.memory_space<vmem>>) attributes {dimension_semantics = [#tpu.dimension_semantics<parallel>], iteration_bounds = array<i64: 2>, scalar_prefetch = 0 : i64, scratch_operands = 0 : i64, tpu.core_type = #tpu.core_type<tc>, window_params = [{transform_indices = @transform_0, window_bounds = array<i64: 8, 128>}, {pipeline_mode = #tpu.pipeline_mode<synchronous>, transform_indices = @transform_1, window_bounds = array<i64: 128, 512>}, {pipeline_mode = #tpu.pipeline_mode<synchronous>, transform_indices = @transform_2, window_bounds = array<i64: 1, 512>}, {pipeline_mode = #tpu.pipeline_mode<synchronous>, transform_indices = @transform_3, window_bounds = array<i64: 512, 4>}, {transform_indices = @transform_4, window_bounds = array<i64: 8, 128>}]} {
    %c0 = arith.constant 0 : index
    %c0_0 = arith.constant 0 : index
    %0 = vector.load %arg1[%c0, %c0_0] : memref<8x128xf32, #tpu.memory_space<vmem>>, vector<8x128xf32>
    %c0_1 = arith.constant 0 : index
    %c0_2 = arith.constant 0 : index
    %1 = vector.load %arg2[%c0_1, %c0_2] : memref<128x512xf32, #tpu.memory_space<vmem>>, vector<128x512xf32>
    %cst = arith.constant dense<0.000000e+00> : vector<8x512xf32>
    %2 = tpu.matmul %0, %1, %cst {dimension_numbers = #tpu.dot_dimension_numbers<[1], [0], [0], [1], [0, 0, 1, 1], [], []>} : vector<8x128xf32>, vector<128x512xf32>, vector<8x512xf32> -> vector<8x512xf32>
    %c0_3 = arith.constant 0 : index
    %c0_4 = arith.constant 0 : index
    %3 = vector.load %arg3[%c0_3, %c0_4] : memref<1x512xf32, #tpu.memory_space<vmem>>, vector<1x512xf32>
    %4 = vector.broadcast %3 : vector<1x512xf32> to vector<8x512xf32>
    %5 = arith.addf %2, %4 : vector<8x512xf32>
    %cst_5 = arith.constant 0.000000e+00 : f32
    %6 = vector.broadcast %cst_5 : f32 to vector<8x512xf32>
    %7 = arith.maximumf %5, %6 : vector<8x512xf32>
    %c0_6 = arith.constant 0 : index
    %c0_7 = arith.constant 0 : index
    %8 = vector.load %arg4[%c0_6, %c0_7] : memref<512x4xf32, #tpu.memory_space<vmem>>, vector<512x4xf32>
    %cst_8 = arith.constant dense<0.000000e+00> : vector<8x4xf32>
    %9 = tpu.matmul %7, %8, %cst_8 {dimension_numbers = #tpu.dot_dimension_numbers<[1], [0], [0], [1], [0, 0, 1, 1], [], []>} : vector<8x512xf32>, vector<512x4xf32>, vector<8x4xf32> -> vector<8x4xf32>
    %cst_9 = arith.constant dense<0xFF800000> : vector<8xf32>
    %10 = vector.multi_reduction <maximumf>, %9, %cst_9 [1] : vector<8x4xf32> to vector<8xf32>
    %11 = vector.shape_cast %10 : vector<8xf32> to vector<8x1xf32>
    %12 = vector.broadcast %11 : vector<8x1xf32> to vector<8x4xf32>
    %13 = arith.subf %9, %12 : vector<8x4xf32>
    %14 = math.exp %13 : vector<8x4xf32>
    %cst_10 = arith.constant dense<0.000000e+00> : vector<8xf32>
    %15 = vector.multi_reduction <add>, %14, %cst_10 [1] : vector<8x4xf32> to vector<8xf32>
    %16 = vector.shape_cast %15 : vector<8xf32> to vector<8x1xf32>
    %17 = tpu.reciprocal %16 {approx = true} : vector<8x1xf32> -> vector<8x1xf32>
    %18 = vector.broadcast %17 : vector<8x1xf32> to vector<8x4xf32>
    %19 = arith.mulf %14, %18 : vector<8x4xf32>
    %20 = vector.extract_strided_slice %19 {offsets = [0, 0], sizes = [8, 1], strides = [1, 1]} : vector<8x4xf32> to vector<8x1xf32>
    %21 = vector.extract_strided_slice %0 {offsets = [0, 0], sizes = [8, 32], strides = [1, 1]} : vector<8x128xf32> to vector<8x32xf32>
    %22 = vector.broadcast %20 : vector<8x1xf32> to vector<8x32xf32>
    %23 = arith.mulf %22, %21 : vector<8x32xf32>
    %24 = vector.extract_strided_slice %19 {offsets = [0, 1], sizes = [8, 1], strides = [1, 1]} : vector<8x4xf32> to vector<8x1xf32>
    %25 = vector.extract_strided_slice %0 {offsets = [0, 32], sizes = [8, 32], strides = [1, 1]} : vector<8x128xf32> to vector<8x32xf32>
    %26 = vector.broadcast %24 : vector<8x1xf32> to vector<8x32xf32>
    %27 = arith.mulf %26, %25 : vector<8x32xf32>
    %28 = arith.addf %23, %27 : vector<8x32xf32>
    %29 = vector.extract_strided_slice %19 {offsets = [0, 2], sizes = [8, 1], strides = [1, 1]} : vector<8x4xf32> to vector<8x1xf32>
    %30 = vector.extract_strided_slice %0 {offsets = [0, 64], sizes = [8, 32], strides = [1, 1]} : vector<8x128xf32> to vector<8x32xf32>
    %31 = vector.broadcast %29 : vector<8x1xf32> to vector<8x32xf32>
    %32 = arith.mulf %31, %30 : vector<8x32xf32>
    %33 = arith.addf %28, %32 : vector<8x32xf32>
    %34 = vector.extract_strided_slice %19 {offsets = [0, 3], sizes = [8, 1], strides = [1, 1]} : vector<8x4xf32> to vector<8x1xf32>
    %35 = vector.extract_strided_slice %0 {offsets = [0, 96], sizes = [8, 32], strides = [1, 1]} : vector<8x128xf32> to vector<8x32xf32>
    %36 = vector.broadcast %34 : vector<8x1xf32> to vector<8x32xf32>
    %37 = arith.mulf %36, %35 : vector<8x32xf32>
    %38 = arith.addf %33, %37 : vector<8x32xf32>
    %cst_11 = arith.constant 0.000000e+00 : f32
    %39 = vector.broadcast %cst_11 : f32 to vector<8x128xf32>
    %c0_12 = arith.constant 0 : index
    %c0_13 = arith.constant 0 : index
    %40 = vector.load %arg5[%c0_12, %c0_13] : memref<8x128xf32, #tpu.memory_space<vmem>>, vector<8x128xf32>
    tpu.vector_store %arg5[%c0_12, %c0_13], %39 {strides = array<i32>} : memref<8x128xf32, #tpu.memory_space<vmem>>, vector<8x128xf32>,
    %c0_14 = arith.constant 0 : index
    %c0_15 = arith.constant 0 : index
    %41 = vector.load %arg5[%c0_14, %c0_15] : memref<8x128xf32, #tpu.memory_space<vmem>>, vector<8x32xf32>
    tpu.vector_store %arg5[%c0_14, %c0_15], %38 {strides = array<i32>} : memref<8x128xf32, #tpu.memory_space<vmem>>, vector<8x32xf32>,
    %c0_16 = arith.constant 0 : index
    %c32 = arith.constant 32 : index
    %42 = vector.load %arg5[%c0_16, %c32] : memref<8x128xf32, #tpu.memory_space<vmem>>, vector<8x4xf32>
    tpu.vector_store %arg5[%c0_16, %c32], %19 {strides = array<i32>} : memref<8x128xf32, #tpu.memory_space<vmem>>, vector<8x4xf32>,
    return
  }
  func.func @transform_0(%arg0: i32) -> (i32, i32) {
    %c0_i32 = arith.constant 0 : i32
    %c0_i32_0 = arith.constant 0 : i32
    return %arg0, %c0_i32 : i32, i32
  }
  func.func @transform_1(%arg0: i32) -> (i32, i32) {
    %c0_i32 = arith.constant 0 : i32
    %c0_i32_0 = arith.constant 0 : i32
    %c0_i32_1 = arith.constant 0 : i32
    return %c0_i32, %c0_i32_0 : i32, i32
  }
  func.func @transform_2(%arg0: i32) -> (i32, i32) {
    %c0_i32 = arith.constant 0 : i32
    %c0_i32_0 = arith.constant 0 : i32
    %c0_i32_1 = arith.constant 0 : i32
    return %c0_i32, %c0_i32_0 : i32, i32
  }
  func.func @transform_3(%arg0: i32) -> (i32, i32) {
    %c0_i32 = arith.constant 0 : i32
    %c0_i32_0 = arith.constant 0 : i32
    %c0_i32_1 = arith.constant 0 : i32
    return %c0_i32, %c0_i32_0 : i32, i32
  }
  func.func @transform_4(%arg0: i32) -> (i32, i32) {
    %c0_i32 = arith.constant 0 : i32
    %c0_i32_0 = arith.constant 0 : i32
    return %arg0, %c0_i32 : i32, i32
  }
}

</mosaic_0001>

<bundles_post_ra>
// kernel: fwd.1
= control target key start
LH: loop header
LB: loop body
LE: loop exit
PB: predicated region body
PF: predicated region fallthrough
CT: control target
= control target key end

     0   :  { %9 = vsyncpa [#allocation3], 0  ;;  %s1278_s0 = inlined_call_operand.vmem [shape: f32[16,128], index: 0, kind: input, shape index: {}]   ;;  %s1279_s1 = inlined_call_operand.hbm [shape: f32[128,512], index: 1, kind: input, shape index: {}]   ;;  %s1280_s2 = inlined_call_operand.vmem [shape: f32[1,512], index: 2, kind: input, shape index: {}]   ;;  %s1281_s3 = inlined_call_operand.hbm [shape: f32[512,4], index: 3, kind: input, shape index: {}]   ;;  %s1282_s4 = inlined_call_operand.vmem [shape: f32[16,128], index: 4, kind: output, shape index: {}]  }
   0x1   :  { %10 = vsyncpa [#allocation5], 0  ;;  %s1162_s15 = smov 0  }
   0x2 LB: > { %s1123_s16 = smov [#allocation2]   ;;  %s1168_s18 = sadd.s32 4294967295, %s1121_s15   ;;  %s1121_s15 = sphi %s1162_s15, %s16_s15  }
   0x3   : > { %s148_s17 = sshll.u32 %s1123_s16, 4  ;;  %p793_p0 = scmp.ge.s32.totalorder %s1121_s15, 1  ;;  %s149_s17 = int_to_ptr.vmem [resolvable:$true] %s148_s17 }
   0x4   : > { %p136_p1 = scmp.lt.s32.totalorder %s1121_s15, 3  ;;  %p1283_p3 = scmp.eq.s32.totalorder %s1168_s18, 0 }
   0x5   : > { %s1124_s20 = smov [#allocation4]   ;;  %s1051_s25 = scalar_lea.hbm %s1279_s1, 8192 }
   0x6   : > { %p1172_p2 = pnand %p793_p0, %p136_p1  ;;  %s164_s21 = sshll.u32 %s1124_s20, 4  ;;  %s1185_s21 = int_to_ptr.vmem [resolvable:$true] %s164_s21 }
   0x7   : > { %p1052_p6 = scmp.ne.s32.totalorder %s1279_s1, %s1051_s25  ;;  %p1058_p10 = scmp.lt.u32.totalorder %s1051_s25, %s1279_s1 }
   0x8   : > { %s1285_s19 = scalar_select %p1172_p2, 1, 0 }
   0x9   : > { %p1010_p4 = pneg %p1172_p2 }
   0xb   : > { %p1181_p5 = pnand %p1283_p3, %p1010_p4 }
   0xd   : > { %p1053_p7 = pneg %p1181_p5 }
   0xf   : > { %p1054_p8 = pnand %p1053_p7, %p1052_p6 }
  0x11   : > { %p1055_p9 = pneg %p1054_p8 }
  0x13   : > { %p1060_p11 = pnand %p1058_p10, %p1055_p9 }
  0x15   : > { %1063 = shalt.err (!%p1060_p11)
}
  0x16   : > { %s1064_s30 = scalar_lea.vmem %s149_s17, 8192  ;;  %p1072_p1 = scmp.lt.s32.totalorder %s149_s17, %s149_s17 }
  0x17   : > { %p1065_p12 = scmp.ne.s32.totalorder %s149_s17, %s1064_s30  ;;  %p1073_p4 = scmp.lt.s32.totalorder %s1064_s30, %s1064_s30 }
  0x19   : > { %p1067_p13 = pnand %p1065_p12, %p1053_p7  ;;  %p1074_p3 = por %p1073_p4, %p1072_p1 }
  0x1b   : > { %p1068_p0 = pneg %p1067_p13 }
  0x1d   : > { %p1075_p2 = pnand %p1074_p3, %p1068_p0 }
  0x1f   : > { %1078 = shalt.err (!%p1075_p2)
}
  0x20   : > { %s1125_s5 = smov 512   ;;  %s1126_s6 = smov 32  }
  0x21   : > { %1013 = dma.hbm_to_vmem [thread:$0]  (!%p1181_p5), %s1279_s1, 8192, %s149_s17, [#allocation3], %s1125_s5, %s1125_s5, %s1126_s6  }
  0x22   : > { %s1079_s11 = scalar_lea.hbm %s1281_s3, 8192 }
  0x23   : > { %p1080_p6 = scmp.ne.s32.totalorder %s1281_s3, %s1079_s11  ;;  %p1086_p8 = scmp.lt.u32.totalorder %s1079_s11, %s1281_s3 }
  0x25   : > { %p1082_p2 = pnand %p1080_p6, %p1053_p7 }
  0x27   : > { %p1083_p3 = pneg %p1082_p2 }
  0x29   : > { %p1088_p9 = pnand %p1086_p8, %p1083_p3 }
  0x2b   : > { %1091 = shalt.err (!%p1088_p9)
}
  0x2c   : > { %s1092_s17 = scalar_lea.vmem %s1185_s21, 8192  ;;  %p1100_p13 = scmp.lt.s32.totalorder %s1185_s21, %s1185_s21 }
  0x2d   : > { %p1093_p10 = scmp.ne.s32.totalorder %s1185_s21, %s1092_s17  ;;  %p1101_p0 = scmp.lt.s32.totalorder %s1092_s17, %s1092_s17 }
  0x2f   : > { %p1095_p11 = pnand %p1093_p10, %p1053_p7  ;;  %p1102_p1 = por %p1101_p0, %p1100_p13 }
  0x31   : > { %p1096_p12 = pneg %p1095_p11 }
  0x33   : > { %p1103_p4 = pnand %p1102_p1, %p1096_p12 }
  0x35   : > { %1106 = shalt.err (!%p1103_p4)
}
  0x36   : > { %s1127_s20 = smov 128   ;;  %s1128_s23 = smov 8  }
  0x37   : > { %1016 = dma.hbm_to_vmem [thread:$0]  (!%p1181_p5), %s1281_s3, 8192, %s1185_s21, [#allocation5], %s1127_s20, %s1127_s20, %s1128_s23  }
  0x38   : > { %p1287_p6 = scmp.ne.s32.totalorder %s1285_s19, 0 }
  0x39   : > { %p1288_p7 = scmp.eq.s32.totalorder (!%p1287_p6), %s1168_s18, 0 }
  0x3a   : > { %187 = sbr.rel (%p1287_p6) target bundleno = 1115 (0x45b), region = 36 }
  0x41   : > { %1112 = dma.done.wait (%p1288_p7), [#allocation3], 8192   ;;  %p1289_p2 = pmov %p1288_p7 }
  0x43   : > { %1114 = vsyncadd (%p1289_p2), [#allocation3], 4294959104  ;;  %p1290_p3 = pmov %p1289_p2 }
  0x44   : > { %p1291_p8 = pmov %p1289_p2 }
  0x45   : > { %1116 = dma.done.wait (%p1290_p3), [#allocation5], 8192  }
  0x46   : > { %1118 = vsyncadd (%p1291_p8), [#allocation5], 4294959104  ;;  %p215_p9 = scmp.lt.s32.totalorder %s1168_s18, 1  ;;  %v1129_v0 = vmov 0.0   ;;  %v225_v1 = vld [vmem:[#allocation2 + $0x8] sm:$0xff]  ;;  %v227_v3 = vld [vmem:[#allocation2 + $0x18] sm:$0xff] }
  0x47   : > { %374 = vmatprep.mubr.f32.mxu0 %v1129_v0  ;;  %445 = vmatprep.mubr.f32.mxu1 %v1129_v0  ;;  %v229_v2 = vld [vmem:[#allocation2 + $0x28] sm:$0xff]  ;;  %v231_v5 = vld [vmem:[#allocation2 + $0x38] sm:$0xff]  ;;  %v224_v6 = vld [vmem:[#allocation2] sm:$0xff]  ;;  %vm660_vm0 = vcmask 31744   ;;  %s1134_s5 = smov 96   ;;  %s1135_s6 = smov 64  }
  0x48   : > { %s1293_s18 = smov (!%p215_p9, %s1168_s18), 1  ;;  %v874_v4 = vpack.c.bf16 %v229_v2, %v225_v1  ;;  %v228_v7 = vld [vmem:[#allocation2 + $0x20] sm:$0xff]  ;;  %v906_v8 = vpack.c.bf16 %v231_v5, %v227_v3  ;;  %v226_v10 = vld [vmem:[#allocation2 + $0x10] sm:$0xff]  ;;  %v233_v12 = vld [vmem:[#allocation2 + $0x48] sm:$0xff]  ;;  %s1136_s7 = smov 32   ;;  %vm709_vm1 = vcmask 261120  }
  0x49   : > { %s800_s19 = sshll.u32 %s1293_s18, 3  ;;  %v876_v9 = vpack.c.bf16 %v228_v7, %v224_v6  ;;  %v230_v11 = vld [vmem:[#allocation2 + $0x30] sm:$0xff]  ;;  %v237_v14 = vld [vmem:[#allocation2 + $0x68] sm:$0xff]  ;;  %v235_v15 = vld [vmem:[#allocation2 + $0x58] sm:$0xff]  ;;  %vm714_vm2 = vcmask 294144  }
  0x4a   : > { %s1254_s26 = scalar_lea.vmem %s1282_s4, %s800_s19  ;;  %875 = vmatprep.subr.bf16.mxu0 %v874_v4  ;;  %v908_v13 = vpack.c.bf16 %v230_v11, %v226_v10  ;;  %v239_v16 = vld [vmem:[#allocation2 + $0x78] sm:$0xff]  ;;  %907 = vmatprep.subr.bf16.mxu1 %v906_v8  ;;  %v878_v17 = vpack.c.bf16 %v237_v14, %v233_v12  ;;  %v232_v19 = vld [vmem:[#allocation2 + $0x40] sm:$0xff]  ;;  %v234_v21 = vld [vmem:[#allocation2 + $0x50] sm:$0xff]  ;;  %s218_s29 = scalar_lea.vmem %s1278_s0, %s800_s19 }
  0x4b   : > { %708 = vst [vmem:[%s1254_s26] sm:$0xff] %v1129_v0  ;;  %877 = vmatpush1.bf16.msra.mxu0 %v876_v9  ;;  %v910_v18 = vpack.c.bf16 %v239_v16, %v235_v15  ;;  %v236_v20 = vld [vmem:[#allocation2 + $0x60] sm:$0xff]  ;;  %v238_v23 = vld [vmem:[#allocation2 + $0x70] sm:$0xff]  ;;  %v241_v24 = vld [vmem:[#allocation2 + $0x88] sm:$0xff] }
  0x4c   : > { %909 = vmatpush1.bf16.msra.mxu1 %v908_v13  ;;  %v880_v22 = vpack.c.bf16 %v236_v20, %v232_v19  ;;  %v245_v25 = vld [vmem:[#allocation2 + $0xa8] sm:$0xff]  ;;  %879 = vmatprep.subr.bf16.mxu0 %v878_v17  ;;  %v912_v26 = vpack.c.bf16 %v238_v23, %v234_v21  ;;  %v243_v28 = vld [vmem:[#allocation2 + $0x98] sm:$0xff]  ;;  %v240_v30 = vld [vmem:[#allocation2 + $0x80] sm:$0xff] }
  0x4d   : > { %911 = vmatprep.subr.bf16.mxu1 %v910_v18  ;;  %v882_v27 = vpack.c.bf16 %v245_v25, %v241_v24  ;;  %v247_v29 = vld [vmem:[#allocation2 + $0xb8] sm:$0xff]  ;;  %v244_v32 = vld [vmem:[#allocation2 + $0xa0] sm:$0xff]  ;;  %v242_v33 = vld [vmem:[#allocation2 + $0x90] sm:$0xff] }
  0x4e   : > { %v914_v31 = vpack.c.bf16 %v247_v29, %v243_v28  ;;  %v246_v34 = vld [vmem:[#allocation2 + $0xb0] sm:$0xff]  ;;  %v884_v35 = vpack.c.bf16 %v244_v32, %v240_v30  ;;  %v249_v36 = vld [vmem:[#allocation2 + $0xc8] sm:$0xff]  ;;  %v251_v38 = vld [vmem:[#allocation2 + $0xd8] sm:$0xff] }
  0x4f   : > { %881 = vmatpush1.bf16.msra.mxu0 %v880_v22  ;;  %v253_v37 = vld [vmem:[#allocation2 + $0xe8] sm:$0xff]  ;;  %v916_v39 = vpack.c.bf16 %v246_v34, %v242_v33  ;;  %v255_v41 = vld [vmem:[#allocation2 + $0xf8] sm:$0xff]  ;;  %v248_v42 = vld [vmem:[#allocation2 + $0xc0] sm:$0xff] }
  0x50   : > { %913 = vmatpush1.bf16.msra.mxu1 %v912_v26  ;;  %883 = vmatprep.subr.bf16.mxu0 %v882_v27  ;;  %v886_v40 = vpack.c.bf16 %v253_v37, %v249_v36  ;;  %v252_v43 = vld [vmem:[#allocation2 + $0xe0] sm:$0xff]  ;;  %v918_v44 = vpack.c.bf16 %v255_v41, %v251_v38  ;;  %v250_v45 = vld [vmem:[#allocation2 + $0xd0] sm:$0xff]  ;;  %v257_v47 = vld [vmem:[#allocation2 + $0x108] sm:$0xff] }
  0x51   : > { %915 = vmatprep.subr.bf16.mxu1 %v914_v31  ;;  %v254_v46 = vld [vmem:[#allocation2 + $0xf0] sm:$0xff]  ;;  %v261_v48 = vld [vmem:[#allocation2 + $0x128] sm:$0xff]  ;;  %v259_v49 = vld [vmem:[#allocation2 + $0x118] sm:$0xff]  ;;  %v888_v51 = vpack.c.bf16 %v252_v43, %v248_v42 }
  0x52   : > { %v263_v50 = vld [vmem:[#allocation2 + $0x138] sm:$0xff]  ;;  %v920_v52 = vpack.c.bf16 %v254_v46, %v250_v45  ;;  %v890_v53 = vpack.c.bf16 %v261_v48, %v257_v47  ;;  %v256_v54 = vld [vmem:[#allocation2 + $0x100] sm:$0xff]  ;;  %v258_v56 = vld [vmem:[#allocation2 + $0x110] sm:$0xff] }
  0x53   : > { %885 = vmatpush1.bf16.msra.mxu0 %v884_v35  ;;  %v260_v55 = vld [vmem:[#allocation2 + $0x120] sm:$0xff]  ;;  %v922_v57 = vpack.c.bf16 %v263_v50, %v259_v49  ;;  %v262_v58 = vld [vmem:[#allocation2 + $0x130] sm:$0xff]  ;;  %v265_v59 = vld [vmem:[#allocation2 + $0x148] sm:$0xff] }
  0x54   : > { %917 = vmatpush1.bf16.msra.mxu1 %v916_v39  ;;  %887 = vmatprep.subr.bf16.mxu0 %v886_v40  ;;  %v269_v60 = vld [vmem:[#allocation2 + $0x168] sm:$0xff]  ;;  %v267_v61 = vld [vmem:[#allocation2 + $0x158] sm:$0xff]  ;;  %v892_v63 = vpack.c.bf16 %v260_v55, %v256_v54  ;;  %v924_v0 = vpack.c.bf16 %v262_v58, %v258_v56  ;;  %v264_v2 = vld [vmem:[#allocation2 + $0x140] sm:$0xff] }
  0x55   : > { %919 = vmatprep.subr.bf16.mxu1 %v918_v44  ;;  %v271_v62 = vld [vmem:[#allocation2 + $0x178] sm:$0xff]  ;;  %v894_v1 = vpack.c.bf16 %v269_v60, %v265_v59  ;;  %v268_v3 = vld [vmem:[#allocation2 + $0x160] sm:$0xff]  ;;  %v266_v4 = vld [vmem:[#allocation2 + $0x150] sm:$0xff] }
  0x56   : > { %v926_v5 = vpack.c.bf16 %v271_v62, %v267_v61  ;;  %v270_v6 = vld [vmem:[#allocation2 + $0x170] sm:$0xff]  ;;  %v273_v7 = vld [vmem:[#allocation2 + $0x188] sm:$0xff]  ;;  %v275_v9 = vld [vmem:[#allocation2 + $0x198] sm:$0xff]  ;;  %v896_v11 = vpack.c.bf16 %v268_v3, %v264_v2 }
  0x57   : > { %889 = vmatpush1.bf16.msra.mxu0 %v888_v51  ;;  %v277_v8 = vld [vmem:[#allocation2 + $0x1a8] sm:$0xff]  ;;  %v279_v10 = vld [vmem:[#allocation2 + $0x1b8] sm:$0xff]  ;;  %v928_v12 = vpack.c.bf16 %v270_v6, %v266_v4  ;;  %v272_v14 = vld [vmem:[#allocation2 + $0x180] sm:$0xff] }
  0x58   : > { %921 = vmatpush1.bf16.msra.mxu1 %v920_v52  ;;  %891 = vmatprep.subr.bf16.mxu0 %v890_v53  ;;  %v898_v13 = vpack.c.bf16 %v277_v8, %v273_v7  ;;  %v276_v15 = vld [vmem:[#allocation2 + $0x1a0] sm:$0xff]  ;;  %v274_v16 = vld [vmem:[#allocation2 + $0x190] sm:$0xff]  ;;  %v930_v17 = vpack.c.bf16 %v279_v10, %v275_v9  ;;  %v281_v19 = vld [vmem:[#allocation2 + $0x1c8] sm:$0xff] }
  0x59   : > { %923 = vmatprep.subr.bf16.mxu1 %v922_v57  ;;  %v278_v18 = vld [vmem:[#allocation2 + $0x1b0] sm:$0xff]  ;;  %v285_v20 = vld [vmem:[#allocation2 + $0x1e8] sm:$0xff]  ;;  %v283_v21 = vld [vmem:[#allocation2 + $0x1d8] sm:$0xff]  ;;  %v900_v23 = vpack.c.bf16 %v276_v15, %v272_v14 }
  0x5a   : > { %v287_v22 = vld [vmem:[#allocation2 + $0x1f8] sm:$0xff]  ;;  %v932_v24 = vpack.c.bf16 %v278_v18, %v274_v16  ;;  %v902_v25 = vpack.c.bf16 %v285_v20, %v281_v19  ;;  %v280_v26 = vld [vmem:[#allocation2 + $0x1c0] sm:$0xff]  ;;  %v282_v28 = vld [vmem:[#allocation2 + $0x1d0] sm:$0xff] }
  0x5b   : > { %893 = vmatpush1.bf16.msra.mxu0 %v892_v63  ;;  %v284_v27 = vld [vmem:[#allocation2 + $0x1e0] sm:$0xff]  ;;  %v934_v29 = vpack.c.bf16 %v287_v22, %v283_v21  ;;  %v286_v30 = vld [vmem:[#allocation2 + $0x1f0] sm:$0xff]  ;;  %v473_v32 = vld [vmem:[#allocation4 + $0x88] sm:$0xff] }
  0x5c   : > { %925 = vmatpush1.bf16.msra.mxu1 %v924_v0  ;;  %895 = vmatprep.subr.bf16.mxu0 %v894_v1  ;;  %v472_v31 = vld [vmem:[#allocation4 + $0x80] sm:$0xff]  ;;  %v505_v34 = vld [vmem:[#allocation4 + $0x188] sm:$0xff]  ;;  %v904_v35 = vpack.c.bf16 %v284_v27, %v280_v26  ;;  %v936_v36 = vpack.c.bf16 %v286_v30, %v282_v28  ;;  %v474_v43 = vld [vmem:[#allocation4 + $0x90] sm:$0xff] }
  0x5d   : > { %927 = vmatprep.subr.bf16.mxu1 %v926_v5  ;;  %v504_v33 = vld [vmem:[#allocation4 + $0x180] sm:$0xff]  ;;  %v938_v37 = vpack.c.bf16 %v473_v32, %v472_v31  ;;  %v457_v39 = vld [vmem:[#allocation4 + $0x8] sm:$0xff]  ;;  %v475_v44 = vld [vmem:[#allocation4 + $0x98] sm:$0xff] }
  0x5e   : > { %v456_v38 = vld [vmem:[#allocation4] sm:$0xff]  ;;  %v970_v41 = vpack.c.bf16 %v505_v34, %v504_v33  ;;  %v489_v42 = vld [vmem:[#allocation4 + $0x108] sm:$0xff]  ;;  %v506_v45 = vld [vmem:[#allocation4 + $0x190] sm:$0xff]  ;;  %v942_v50 = vpack.c.bf16 %v475_v44, %v474_v43 }
  0x5f   : > { %897 = vmatpush1.bf16.msra.mxu0 %v896_v11  ;;  %v488_v40 = vld [vmem:[#allocation4 + $0x100] sm:$0xff]  ;;  %v507_v46 = vld [vmem:[#allocation4 + $0x198] sm:$0xff]  ;;  %v940_v48 = vpack.c.bf16 %v457_v39, %v456_v38  ;;  %v458_v51 = vld [vmem:[#allocation4 + $0x10] sm:$0xff] }
  0x60   : > { %929 = vmatpush1.bf16.msra.mxu1 %v928_v12  ;;  %899 = vmatprep.subr.bf16.mxu0 %v898_v13  ;;  %v1262_v47 = vld [vmem:[%s218_s29] sm:$0xff]  ;;  %v972_v49 = vpack.c.bf16 %v489_v42, %v488_v40  ;;  %v459_v52 = vld [vmem:[#allocation4 + $0x18] sm:$0xff]  ;;  %v490_v53 = vld [vmem:[#allocation4 + $0x110] sm:$0xff]  ;;  %v974_v54 = vpack.c.bf16 %v507_v46, %v506_v45 }
  0x61   : > { %931 = vmatprep.subr.bf16.mxu1 %v930_v17  ;;  %v491_v55 = vld [vmem:[#allocation4 + $0x118] sm:$0xff]  ;;  %v476_v56 = vld [vmem:[#allocation4 + $0xa0] sm:$0xff]  ;;  %v477_v57 = vld [vmem:[#allocation4 + $0xa8] sm:$0xff]  ;;  %v944_v60 = vpack.c.bf16 %v459_v52, %v458_v51 }
  0x62   : > { %v508_v58 = vld [vmem:[#allocation4 + $0x1a0] sm:$0xff]  ;;  %v509_v59 = vld [vmem:[#allocation4 + $0x1a8] sm:$0xff]  ;;  %v976_v61 = vpack.c.bf16 %v491_v55, %v490_v53  ;;  %v946_v62 = vpack.c.bf16 %v477_v57, %v476_v56  ;;  %v478_v4 = vld [vmem:[#allocation4 + $0xb0] sm:$0xff] }
  0x63   : > { %901 = vmatpush1.bf16.msra.mxu0 %v900_v23  ;;  %v460_v63 = vld [vmem:[#allocation4 + $0x20] sm:$0xff]  ;;  %v461_v0 = vld [vmem:[#allocation4 + $0x28] sm:$0xff]  ;;  %v978_v2 = vpack.c.bf16 %v509_v59, %v508_v58  ;;  %v479_v5 = vld [vmem:[#allocation4 + $0xb8] sm:$0xff] }
  0x64   : > { %933 = vmatpush1.bf16.msra.mxu1 %v932_v24  ;;  %903 = vmatprep.subr.bf16.mxu0 %v902_v25  ;;  %v492_v1 = vld [vmem:[#allocation4 + $0x120] sm:$0xff]  ;;  %v493_v3 = vld [vmem:[#allocation4 + $0x128] sm:$0xff]  ;;  %v510_v6 = vld [vmem:[#allocation4 + $0x1b0] sm:$0xff]  ;;  %v948_v8 = vpack.c.bf16 %v461_v0, %v460_v63  ;;  %v950_v10 = vpack.c.bf16 %v479_v5, %v478_v4 }
  0x65   : > { %935 = vmatprep.subr.bf16.mxu1 %v934_v29  ;;  %v511_v7 = vld [vmem:[#allocation4 + $0x1b8] sm:$0xff]  ;;  %v980_v9 = vpack.c.bf16 %v493_v3, %v492_v1  ;;  %v462_v11 = vld [vmem:[#allocation4 + $0x30] sm:$0xff]  ;;  %v480_v16 = vld [vmem:[#allocation4 + $0xc0] sm:$0xff]  ;;  %v290_v3 = vlaneseq }
  0x66   : > { %v463_v12 = vld [vmem:[#allocation4 + $0x38] sm:$0xff]  ;;  %v494_v13 = vld [vmem:[#allocation4 + $0x130] sm:$0xff]  ;;  %v982_v14 = vpack.c.bf16 %v511_v7, %v510_v6  ;;  %v481_v17 = vld [vmem:[#allocation4 + $0xc8] sm:$0xff] }
  0x67   : > { %905 = vmatpush1.bf16.msra.mxu0 %v904_v35  ;;  %v495_v15 = vld [vmem:[#allocation4 + $0x138] sm:$0xff]  ;;  %v512_v18 = vld [vmem:[#allocation4 + $0x1c0] sm:$0xff]  ;;  %v513_v19 = vld [vmem:[#allocation4 + $0x1c8] sm:$0xff]  ;;  %v952_v20 = vpack.c.bf16 %v463_v12, %v462_v11  ;;  %v954_v22 = vpack.c.bf16 %v481_v17, %v480_v16  ;;  %v291_v4 = vshrl.u32 %v290_v3, 7 }
  0x68   : > { %937 = vmatpush1.bf16.msra.mxu1 %v936_v36  ;;  %939 = vmatprep.subr.bf16.mxu0 %v938_v37  ;;  %v984_v21 = vpack.c.bf16 %v495_v15, %v494_v13  ;;  %v464_v23 = vld [vmem:[#allocation4 + $0x40] sm:$0xff]  ;;  %v465_v24 = vld [vmem:[#allocation4 + $0x48] sm:$0xff]  ;;  %v986_v26 = vpack.c.bf16 %v513_v19, %v512_v18  ;;  %v482_v28 = vld [vmem:[#allocation4 + $0xd0] sm:$0xff] }
  0x69   : > { %971 = vmatprep.subr.bf16.mxu1 %v970_v41  ;;  %v496_v25 = vld [vmem:[#allocation4 + $0x140] sm:$0xff]  ;;  %v497_v27 = vld [vmem:[#allocation4 + $0x148] sm:$0xff]  ;;  %v483_v29 = vld [vmem:[#allocation4 + $0xd8] sm:$0xff]  ;;  %v956_v32 = vpack.c.bf16 %v465_v24, %v464_v23  ;;  %v292_v5 = vsub.s32 0, %v291_v4  ;;  %v300_v7 = vsub.s32 2, %v291_v4 }
  0x6a   : > { %375 = vmatmul.mubr.f32.vlgmr.msra.gmra.mrb[0].mxu0 %v1262_v47  ;;  %v514_v30 = vld [vmem:[#allocation4 + $0x1d0] sm:$0xff]  ;;  %v515_v31 = vld [vmem:[#allocation4 + $0x1d8] sm:$0xff]  ;;  %v988_v33 = vpack.c.bf16 %v497_v27, %v496_v25  ;;  %v958_v34 = vpack.c.bf16 %v483_v29, %v482_v28  ;;  %v484_v40 = vld [vmem:[#allocation4 + $0xe0] sm:$0xff] }
  0x6b   : > { %446 = vmatmul.mubr.f32.vlgmr.msra.gmra.mrb[0].mxu1 %v1262_v47  ;;  %941 = vmatpush3.bf16.msra.mxu0 %v940_v48  ;;  %v466_v35 = vld [vmem:[#allocation4 + $0x50] sm:$0xff]  ;;  %v467_v36 = vld [vmem:[#allocation4 + $0x58] sm:$0xff]  ;;  %v990_v38 = vpack.c.bf16 %v515_v31, %v514_v30  ;;  %v485_v41 = vld [vmem:[#allocation4 + $0xe8] sm:$0xff] }
  0x6c   : > { %973 = vmatpush3.bf16.msra.mxu1 %v972_v49  ;;  %943 = vmatprep.subr.bf16.mxu0 %v942_v50  ;;  %v498_v37 = vld [vmem:[#allocation4 + $0x150] sm:$0xff]  ;;  %v499_v39 = vld [vmem:[#allocation4 + $0x158] sm:$0xff]  ;;  %v516_v42 = vld [vmem:[#allocation4 + $0x1e0] sm:$0xff]  ;;  %v960_v44 = vpack.c.bf16 %v467_v36, %v466_v35  ;;  %v962_v46 = vpack.c.bf16 %v485_v41, %v484_v40  ;;  %v1131_v40 = vmov 1  }
  0x6d   : > { %975 = vmatprep.subr.bf16.mxu1 %v974_v54  ;;  %v517_v43 = vld [vmem:[#allocation4 + $0x1e8] sm:$0xff]  ;;  %v992_v45 = vpack.c.bf16 %v499_v39, %v498_v37  ;;  %v468_v49 = vld [vmem:[#allocation4 + $0x60] sm:$0xff]  ;;  %v486_v55 = vld [vmem:[#allocation4 + $0xf0] sm:$0xff]  ;;  %v1130_v39 = vmov 3   ;;  %1043 = vset.pattern.permute.xlu1 %v1131_v40 }
  0x6e   : > { %v994_v48 = vpack.c.bf16 %v517_v43, %v516_v42  ;;  %v469_v50 = vld [vmem:[#allocation4 + $0x68] sm:$0xff]  ;;  %v500_v51 = vld [vmem:[#allocation4 + $0x160] sm:$0xff]  ;;  %v487_v56 = vld [vmem:[#allocation4 + $0xf8] sm:$0xff]  ;;  %1045 = vset.pattern.permute.xlu0 %v1130_v39 }
  0x6f   : > { %945 = vmatpush3.bf16.msra.mxu0 %v944_v60  ;;  %v964_v52 = vpack.c.bf16 %v469_v50, %v468_v49  ;;  %v501_v53 = vld [vmem:[#allocation4 + $0x168] sm:$0xff]  ;;  %v518_v57 = vld [vmem:[#allocation4 + $0x1f0] sm:$0xff]  ;;  %v966_v58 = vpack.c.bf16 %v487_v56, %v486_v55  ;;  %v519_v59 = vld [vmem:[#allocation4 + $0x1f8] sm:$0xff] }
  0x70   : > { %977 = vmatpush3.bf16.msra.mxu1 %v976_v61  ;;  %947 = vmatprep.subr.bf16.mxu0 %v946_v62  ;;  %v996_v54 = vpack.c.bf16 %v501_v53, %v500_v51  ;;  %v470_v60 = vld [vmem:[#allocation4 + $0x70] sm:$0xff]  ;;  %v471_v61 = vld [vmem:[#allocation4 + $0x78] sm:$0xff]  ;;  %v998_v62 = vpack.c.bf16 %v519_v59, %v518_v57  ;;  %v288_v6 = vld [vmem:[%s1280_s2] sm:$0xf] }
  0x71   : > { %979 = vmatprep.subr.bf16.mxu1 %v978_v2  ;;  %v968_v63 = vpack.c.bf16 %v471_v61, %v470_v60  ;;  %v502_v0 = vld [vmem:[#allocation4 + $0x170] sm:$0xff]  ;;  %v503_v1 = vld [vmem:[#allocation4 + $0x178] sm:$0xff]  ;;  %v301_v11 = vrot.slane %v288_v6, %v300_v7 }
  0x72   : > { %v1000_v2 = vpack.c.bf16 %v503_v1, %v502_v0 }
  0x73   : > { %949 = vmatpush3.bf16.msra.mxu0 %v948_v8  ;;  %v296_v8 = vsub.s32 1, %v291_v4 }
  0x74   : > { %981 = vmatpush3.bf16.msra.mxu1 %v980_v9  ;;  %951 = vmatprep.subr.bf16.mxu0 %v950_v10  ;;  %v304_v9 = vsub.s32 3, %v291_v4  ;;  %v293_v10 = vrot.slane %v288_v6, %v292_v5 }
  0x75   : > { %983 = vmatprep.subr.bf16.mxu1 %v982_v14  ;;  %v297_v12 = vrot.slane %v288_v6, %v296_v8 }
  0x76   : > { %v305_v13 = vrot.slane %v288_v6, %v304_v9 }
  0x77   : > { %953 = vmatpush3.bf16.msra.mxu0 %v952_v20 }
  0x78   : > { %985 = vmatpush3.bf16.msra.mxu1 %v984_v21  ;;  %955 = vmatprep.subr.bf16.mxu0 %v954_v22 }
  0x79   : > { %987 = vmatprep.subr.bf16.mxu1 %v986_v26 }
  0x7b   : > { %957 = vmatpush3.bf16.msra.mxu0 %v956_v32 }
  0x7c   : > { %989 = vmatpush3.bf16.msra.mxu1 %v988_v33  ;;  %959 = vmatprep.subr.bf16.mxu0 %v958_v34 }
  0x7d   : > { %991 = vmatprep.subr.bf16.mxu1 %v990_v38 }
  0x7f   : > { %961 = vmatpush3.bf16.msra.mxu0 %v960_v44  ;;  %v1132_v44 = vmov 2  }
  0x80   : > { %993 = vmatpush3.bf16.msra.mxu1 %v992_v45  ;;  %963 = vmatprep.subr.bf16.mxu0 %v962_v46  ;;  %v1133_v45 = vmov 0  }
  0x81   : > { %995 = vmatprep.subr.bf16.mxu1 %v994_v48 }
  0x83   : > { %965 = vmatpush3.bf16.msra.mxu0 %v964_v52 }
  0x84   : > { %997 = vmatpush3.bf16.msra.mxu1 %v996_v54  ;;  %967 = vmatprep.subr.bf16.mxu0 %v966_v58 }
  0x85   : > { %999 = vmatprep.subr.bf16.mxu1 %v998_v62 }
  0x87   : > { %969 = vmatpush3.bf16.msra.mxu0 %v968_v63 }
  0x88   : > { %1001 = vmatpush3.bf16.msra.mxu1 %v1000_v2 }
 0x13d   : > { %v376_v14 = vpop.f32.mrb[0].mxu0 }
 0x13e   : > { %v377_v15 = vadd.f32 %v376_v14, %v293_v10  ;;  %v447_v16 = vpop.f32.mrb[0].mxu1  ;;  %v378_v17 = vpop.f32.mrb[1].mxu0 }
 0x13f   : > { %v448_v18 = vadd.f32 %v447_v16, %v301_v11  ;;  %v379_v19 = vadd.f32 %v378_v17, %v297_v12  ;;  %v449_v20 = vpop.f32.mrb[1].mxu1 }
 0x140   : > { %v450_v21 = vadd.f32 %v449_v20, %v305_v13  ;;  %v452_v23 = vmax.f32 %v377_v15, 0.0 }
 0x141   : > { %v453_v22 = vmax.f32 %v379_v19, 0.0  ;;  %v454_v25 = vmax.f32 %v448_v18, 0.0 }
 0x142   : > { %v455_v24 = vmax.f32 %v450_v21, 0.0 }
 0x143   : > { %584 = vmatprep.mubr.f32.mxu0 %v453_v22 }
 0x144   : > { %654 = vmatprep.mubr.f32.mxu1 %v455_v24  ;;  %585 = vmatmul.mubr.f32.vlgmr.msra.gmra.mrb[2].mxu0 %v452_v23 }
 0x145   : > { %655 = vmatmul.mubr.f32.vlgmr.msra.gmra.mrb[2].mxu1 %v454_v25 }
 0x217   : > { %v836_v26 = vpop.f32.mrb[2].mxu0 }
 0x218   : > { %v871_v27 = vpop.f32.mrb[2].mxu1  ;;  %v837_v28 = vpop.f32.mrb[3].mxu0 }
 0x219   : > { %v838_v29 = vadd.f32 %v837_v28, %v836_v26  ;;  %v872_v30 = vpop.f32.mrb[3].mxu1 }
 0x21a   : > { %v873_v31 = vadd.f32 %v872_v30, %v871_v27 }
 0x21c   : > { %v657_v32 = vadd.f32 %v873_v31, %v838_v29 }
 0x21e   : > { %v661_v33 = vsel %vm660_vm0, %v657_v32, -inf }
 0x21f   : > { %662 = vmax.xlane.f32.xlu0 %v661_v33 }
 0x2ac   : > { %v663_v34 = vpop.xlane.xlu0 %662 }
 0x2ad   : > { %v664_v35 = vsub.f32 %v657_v32, %v663_v34 }
 0x2af   : > { %v665_v36 = vmul.f32 1.442695, %v664_v35 }
 0x2b1   : > { %1047 = vpow2.f32 %v665_v36 }
 0x2bb   : > { %v1048_v37 = vpop.eup %1047 }
 0x2bc   : > { %v667_v38 = vsel %vm660_vm0, %v1048_v37, 0.0 }
 0x2bd   : > { %668 = vadd.xlane.f32.xlu0 %v667_v38 }
 0x34a   : > { %v669_v41 = vpop.xlane.xlu0 %668 }
 0x34b   : > { %1049 = vrcp.f32 %v669_v41 }
 0x355   : > { %v1050_v42 = vpop.eup %1049 }
 0x356   : > { %v671_v43 = vmul.f32 %v1050_v42, %v1048_v37 }
 0x358   : > { %699 = vperm.xlu0 %1045, %v671_v43   ;;  %679 = vperm.xlu1 %1043, %v671_v43  }
 0x35c   : > { %1044 = vset.pattern.permute.xlu1 %v1132_v44 }
 0x35d   : > { %689 = vperm.xlu1 %1044, %v671_v43  }
 0x361   : > { %1046 = vset.pattern.permute.xlu1 %v1133_v45 }
 0x362   : > { %674 = vperm.xlu1 %1046, %v671_v43  }
 0x3d7   : > { %v680_v46 = vpop.permute.xlu1 %679  ;;  %v700_v51 = vpop.permute.xlu0 %699 }
 0x3d8   : > { %v682_v48 = vmul.f32 %v680_v46, %v1262_v47  ;;  %v702_v52 = vmul.f32 %v700_v51, %v1262_v47 }
 0x3da   : > { %684 = vrot.lane.b32.xlu1 %v682_v48, %s1134_s5 }
 0x3dc   : > { %v690_v49 = vpop.permute.xlu1 %689 }
 0x3dd   : > { %v692_v50 = vmul.f32 %v690_v49, %v1262_v47 }
 0x3df   : > { %694 = vrot.lane.b32.xlu1 %v692_v50, %s1135_s6 }
 0x3e1   : > { %v675_v53 = vpop.permute.xlu1 %674 }
 0x3e2   : > { %v677_v55 = vmul.f32 %v675_v53, %v1262_v47 }
 0x3e3   : > { %704 = vrot.lane.b32.xlu1 %v702_v52, %s1136_s7 }
 0x3e7   : > { %711 = vrot.lane.b32.xlu1 %v671_v43, %s1136_s7 }
 0x44c   : > { %v685_v54 = vpop.permute.xlu1 %684 }
 0x44d   : > { %v687_v57 = vadd.f32 %v685_v54, %v677_v55 }
 0x451   : > { %v695_v56 = vpop.permute.xlu1 %694 }
 0x452   : > { %v697_v58 = vadd.f32 %v695_v56, %v687_v57 }
 0x455   : > { %v705_v59 = vpop.permute.xlu1 %704 }
 0x456   : > { %v707_v60 = vadd.f32 %v705_v59, %v697_v58 }
 0x458   : > { %710 = vst.msk [vmem:[%s1254_s26] sm:$0xff] %vm709_vm1, %v707_v60 }
 0x459   : > { %v712_v61 = vpop.permute.xlu1 %711 }
 0x45a   : > { %715 = vst.msk [vmem:[%s1254_s26] sm:$0xff] %vm714_vm2, %v712_v61 }
 0x45b PF: > { %s16_s15 = sadd.s32 1, %s1121_s15  }
 0x45c   : > { %p13_p5 = scmp.ge.s32.totalorder %s16_s15, 4  }
 0x45e   :  { %15 = sbr.rel (!%p13_p5) target bundleno = 2 (0x2), region = 75 }
 0x465   :  { %735 = vsyncpa [#allocation3], 1 }
 0x466   :  { %737 = vsyncpa [#allocation3 + $0x1], 1 }
 0x467   :  { %738 = vsyncpa [#allocation5], 1 }

</bundles_post_ra>
